<compile_context>
chip_gen: v5e
topology: v5e:2x2
jax: 0.10.0
libtpu: 0.0.40
codegen_flags: <defaults>
</compile_context>

<pallas_src>
import functools

import jax
import jax.numpy as jnp
from jax.experimental import pallas as pl
from jax.experimental.pallas import tpu as pltpu


def _round_up(x, m):
    return ((x + m - 1) // m) * m


# ----------------------------------------------------------------------------
# Fused kernel: one-hot + fc1 + relu + fc2 + LayerNorm + relu + fc3
# ----------------------------------------------------------------------------
def transition_mlp_kernel(s_ref, a_ref, w1s_ref, w1a_ref, b1_ref,
                          w2_ref, b2_ref, g_ref, be_ref, w3_ref, b3_ref,
                          o_ref):
    s = s_ref[...]                                    # (TB, K*D) f32
    tb = s.shape[0]
    a_tot = w1a_ref.shape[0]                          # K * action_dim
    inv_h = 1.0 / w2_ref.shape[0]                     # python const at trace

    # One-hot of the integer action, built in-kernel (iota compare). Emitted
    # directly in bf16 since it only feeds the MXU.
    ids = jax.lax.broadcasted_iota(jnp.int32, (tb, a_tot), 1)
    onehot = (ids == a_ref[...]).astype(jnp.bfloat16)  # (TB, K*A)

    # fc1 on the (virtually) concatenated [state, one_hot] via split weights.
    # bf16 operands, f32 accumulation; bias add in f32.
    h = (jnp.dot(s.astype(jnp.bfloat16), w1s_ref[...],
                 preferred_element_type=jnp.float32)
         + jnp.dot(onehot, w1a_ref[...], preferred_element_type=jnp.float32)
         + b1_ref[...])
    h = jnp.maximum(h, 0.0)                           # act1 = relu

    # fc2 -> LayerNorm (one-pass stats) -> relu
    h2 = (jnp.dot(h.astype(jnp.bfloat16), w2_ref[...],
                  preferred_element_type=jnp.float32) + b2_ref[...])
    ssum = jnp.sum(h2, axis=-1, keepdims=True)
    ssq = jnp.sum(h2 * h2, axis=-1, keepdims=True)
    mu = ssum * inv_h
    var = ssq * inv_h - mu * mu                       # biased variance
    hn = (h2 - mu) * jax.lax.rsqrt(var + 1e-5) * g_ref[...] + be_ref[...]
    h3 = jnp.maximum(hn, 0.0)                         # act2 = relu

    # fc3 (lane-dense output store: K*D is a multiple of 128)
    o_ref[...] = (jnp.dot(h3.astype(jnp.bfloat16), w3_ref[...],
                          preferred_element_type=jnp.float32)
                  + b3_ref[...])


def transition_mlp_forward(state, action, params, *, num_objects, input_dim,
                           action_dim, tile_b=512):
    """state: (B, K, D) f32; action: (B,) int -> out: (B, K, D) f32."""
    B = state.shape[0]
    KD = num_objects * input_dim
    KA = num_objects * action_dim
    H = params["w2"].shape[0]

    # Batch tile: multiple of 8 (sublane), capped so activations + weights
    # stay tiny relative to the 32 MiB scoped-VMEM default (v7x-safe).
    tile_b = min(tile_b, _round_up(B, 8))
    Bp = _round_up(B, tile_b)
    grid = (Bp // tile_b,)

    s_flat = state.reshape(B, KD).astype(jnp.float32)
    a = action.reshape(B, 1).astype(jnp.int32)
    if Bp != B:
        s_flat = jnp.pad(s_flat, ((0, Bp - B), (0, 0)))
        a = jnp.pad(a, ((0, Bp - B), (0, 0)))

    io_map = lambda i: (i, 0)          # state / action / output advance with grid
    resident = lambda i: (0, 0)        # weights stay resident in VMEM

    weight_names = ("w1_state", "w1_action", "b1", "w2", "b2",
                    "ln_g", "ln_b", "w3", "b3")
    weight_specs = [pl.BlockSpec(params[n].shape, resident)
                    for n in weight_names]

    flops = 2 * Bp * (KD * H + KA * H + H * H + H * KD)
    bytes_accessed = (4 * Bp * KD                                   # state in
                      + 4 * Bp                                      # action in
                      + 2 * (KD * H + KA * H + H * H + H * KD)      # bf16 weights
                      + 4 * (4 * H + KD)                            # f32 biases/LN
                      + 4 * Bp * KD)                                # output
    cost = pl.CostEstimate(flops=flops, transcendentals=Bp,
                           bytes_accessed=bytes_accessed)

    out = pl.pallas_call(
        transition_mlp_kernel,
        out_shape=jax.ShapeDtypeStruct((Bp, KD), jnp.float32),
        grid=grid,
        in_specs=[pl.BlockSpec((tile_b, KD), io_map),
                  pl.BlockSpec((tile_b, 1), io_map)] + weight_specs,
        out_specs=pl.BlockSpec((tile_b, KD), io_map),
        compiler_params=pltpu.CompilerParams(
            dimension_semantics=("parallel",)),
        cost_estimate=cost,
    )(s_flat, a,
      params["w1_state"], params["w1_action"], params["b1"],
      params["w2"], params["b2"],
      params["ln_g"], params["ln_b"],
      params["w3"], params["b3"])

    return out[:B].reshape(B, num_objects, input_dim)


# ----------------------------------------------------------------------------
# Parameter setup
# ----------------------------------------------------------------------------
def init_params(key, input_dim, hidden_dim, action_dim, num_objects):
    KD = num_objects * input_dim
    KA = num_objects * action_dim
    ks = jax.random.split(key, 8)

    def w(k, shape, dtype, scale=0.05):
        return (scale * jax.random.normal(k, shape)).astype(dtype)

    # Linear weights stored as (in, out) in bf16 (MXU-native); biases and
    # LayerNorm params in f32. fc1 is pre-split into the block multiplying the
    # state part and the block multiplying the one-hot part of the
    # concatenated input (cat order in torch: [state, action_vec]).
    return {
        "w1_state": w(ks[0], (KD, hidden_dim), jnp.bfloat16),
        "w1_action": w(ks[1], (KA, hidden_dim), jnp.bfloat16),
        "b1": w(ks[2], (1, hidden_dim), jnp.float32),
        "w2": w(ks[3], (hidden_dim, hidden_dim), jnp.bfloat16),
        "b2": w(ks[4], (1, hidden_dim), jnp.float32),
        "ln_g": jnp.ones((1, hidden_dim), jnp.float32),
        "ln_b": jnp.zeros((1, hidden_dim), jnp.float32),
        "w3": w(ks[5], (hidden_dim, KD), jnp.bfloat16),
        "b3": w(ks[6], (1, KD), jnp.float32),
    }


if __name__ == "__main__":
    # Small shapes consistent with the module (lane-dense: H and K*D = 128).
    batch = 2
    num_objects = 4
    input_dim = 32          # K*D = 128
    action_dim = 4          # K*A = 16
    hidden_dim = 128

    key = jax.random.PRNGKey(0)
    k_s, k_a, k_p = jax.random.split(key, 3)
    state = jax.random.normal(k_s, (batch, num_objects, input_dim), jnp.float32)
    action = jax.random.randint(k_a, (batch,), 0, num_objects * action_dim,
                                dtype=jnp.int32)
    params = init_params(k_p, input_dim, hidden_dim, action_dim, num_objects)

    fwd = jax.jit(functools.partial(transition_mlp_forward,
                                    num_objects=num_objects,
                                    input_dim=input_dim,
                                    action_dim=action_dim))
    out = fwd(state, action, params)
    jax.block_until_ready(out)

    assert out.shape == (batch, num_objects, input_dim)
    assert jnp.all(jnp.isfinite(out))
    print("KERNEL_OK")
</pallas_src>

<mosaic_0001>
module attributes {stable_mosaic.version = 11 : i64} {
  func.func @transition_mlp_kernel(%arg0: i32, %arg1: memref<8x128xf32, #tpu.memory_space<vmem>>, %arg2: memref<8x1xi32, #tpu.memory_space<vmem>>, %arg3: memref<128x128xbf16, #tpu.memory_space<vmem>>, %arg4: memref<16x128xbf16, #tpu.memory_space<vmem>>, %arg5: memref<1x128xf32, #tpu.memory_space<vmem>>, %arg6: memref<128x128xbf16, #tpu.memory_space<vmem>>, %arg7: memref<1x128xf32, #tpu.memory_space<vmem>>, %arg8: memref<1x128xf32, #tpu.memory_space<vmem>>, %arg9: memref<1x128xf32, #tpu.memory_space<vmem>>, %arg10: memref<128x128xbf16, #tpu.memory_space<vmem>>, %arg11: memref<1x128xf32, #tpu.memory_space<vmem>>, %arg12: memref<8x128xf32, #tpu.memory_space<vmem>>) attributes {dimension_semantics = [#tpu.dimension_semantics<parallel>], iteration_bounds = array<i64: 1>, scalar_prefetch = 0 : i64, scratch_operands = 0 : i64, tpu.core_type = #tpu.core_type<tc>, window_params = [{transform_indices = @transform_0, window_bounds = array<i64: 8, 128>}, {transform_indices = @transform_1, window_bounds = array<i64: 8, 1>}, {pipeline_mode = #tpu.pipeline_mode<synchronous>, transform_indices = @transform_2, window_bounds = array<i64: 128, 128>}, {pipeline_mode = #tpu.pipeline_mode<synchronous>, transform_indices = @transform_3, window_bounds = array<i64: 16, 128>}, {pipeline_mode = #tpu.pipeline_mode<synchronous>, transform_indices = @transform_4, window_bounds = array<i64: 1, 128>}, {pipeline_mode = #tpu.pipeline_mode<synchronous>, transform_indices = @transform_5, window_bounds = array<i64: 128, 128>}, {pipeline_mode = #tpu.pipeline_mode<synchronous>, transform_indices = @transform_6, window_bounds = array<i64: 1, 128>}, {pipeline_mode = #tpu.pipeline_mode<synchronous>, transform_indices = @transform_7, window_bounds = array<i64: 1, 128>}, {pipeline_mode = #tpu.pipeline_mode<synchronous>, transform_indices = @transform_8, window_bounds = array<i64: 1, 128>}, {pipeline_mode = #tpu.pipeline_mode<synchronous>, transform_indices = @transform_9, window_bounds = array<i64: 128, 128>}, {pipeline_mode = #tpu.pipeline_mode<synchronous>, transform_indices = @transform_10, window_bounds = array<i64: 1, 128>}, {transform_indices = @transform_11, window_bounds = array<i64: 8, 128>}]} {
    %c0 = arith.constant 0 : index
    %c0_0 = arith.constant 0 : index
    %0 = vector.load %arg1[%c0, %c0_0] : memref<8x128xf32, #tpu.memory_space<vmem>>, vector<8x128xf32>
    %1 = tpu.iota {dimensions = array<i32: 1>} : vector<8x16xi32>
    %c0_1 = arith.constant 0 : index
    %c0_2 = arith.constant 0 : index
    %2 = vector.load %arg2[%c0_1, %c0_2] : memref<8x1xi32, #tpu.memory_space<vmem>>, vector<8x1xi32>
    %3 = vector.broadcast %2 : vector<8x1xi32> to vector<8x16xi32>
    %4 = arith.cmpi eq, %1, %3 : vector<8x16xi32>
    %5 = arith.extui %4 : vector<8x16xi1> to vector<8x16xi32>
    %6 = arith.sitofp %5 : vector<8x16xi32> to vector<8x16xf32>
    %7 = arith.truncf %6 : vector<8x16xf32> to vector<8x16xbf16>
    %8 = arith.truncf %0 : vector<8x128xf32> to vector<8x128xbf16>
    %c0_3 = arith.constant 0 : index
    %c0_4 = arith.constant 0 : index
    %9 = vector.load %arg3[%c0_3, %c0_4] : memref<128x128xbf16, #tpu.memory_space<vmem>>, vector<128x128xbf16>
    %cst = arith.constant dense<0.000000e+00> : vector<8x128xf32>
    %10 = tpu.matmul %8, %9, %cst {dimension_numbers = #tpu.dot_dimension_numbers<[1], [0], [0], [1], [0, 0, 1, 1], [], []>} : vector<8x128xbf16>, vector<128x128xbf16>, vector<8x128xf32> -> vector<8x128xf32>
    %c0_5 = arith.constant 0 : index
    %c0_6 = arith.constant 0 : index
    %11 = vector.load %arg4[%c0_5, %c0_6] : memref<16x128xbf16, #tpu.memory_space<vmem>>, vector<16x128xbf16>
    %cst_7 = arith.constant dense<0.000000e+00> : vector<8x128xf32>
    %12 = tpu.matmul %7, %11, %cst_7 {dimension_numbers = #tpu.dot_dimension_numbers<[1], [0], [0], [1], [0, 0, 1, 1], [], []>} : vector<8x16xbf16>, vector<16x128xbf16>, vector<8x128xf32> -> vector<8x128xf32>
    %13 = arith.addf %10, %12 : vector<8x128xf32>
    %c0_8 = arith.constant 0 : index
    %c0_9 = arith.constant 0 : index
    %14 = vector.load %arg5[%c0_8, %c0_9] : memref<1x128xf32, #tpu.memory_space<vmem>>, vector<1x128xf32>
    %15 = vector.broadcast %14 : vector<1x128xf32> to vector<8x128xf32>
    %16 = arith.addf %13, %15 : vector<8x128xf32>
    %cst_10 = arith.constant 0.000000e+00 : f32
    %17 = vector.broadcast %cst_10 : f32 to vector<8x128xf32>
    %18 = arith.maximumf %16, %17 : vector<8x128xf32>
    %19 = arith.truncf %18 : vector<8x128xf32> to vector<8x128xbf16>
    %c0_11 = arith.constant 0 : index
    %c0_12 = arith.constant 0 : index
    %20 = vector.load %arg6[%c0_11, %c0_12] : memref<128x128xbf16, #tpu.memory_space<vmem>>, vector<128x128xbf16>
    %cst_13 = arith.constant dense<0.000000e+00> : vector<8x128xf32>
    %21 = tpu.matmul %19, %20, %cst_13 {dimension_numbers = #tpu.dot_dimension_numbers<[1], [0], [0], [1], [0, 0, 1, 1], [], []>} : vector<8x128xbf16>, vector<128x128xbf16>, vector<8x128xf32> -> vector<8x128xf32>
    %c0_14 = arith.constant 0 : index
    %c0_15 = arith.constant 0 : index
    %22 = vector.load %arg7[%c0_14, %c0_15] : memref<1x128xf32, #tpu.memory_space<vmem>>, vector<1x128xf32>
    %23 = vector.broadcast %22 : vector<1x128xf32> to vector<8x128xf32>
    %24 = arith.addf %21, %23 : vector<8x128xf32>
    %cst_16 = arith.constant dense<0.000000e+00> : vector<8xf32>
    %25 = vector.multi_reduction <add>, %24, %cst_16 [1] : vector<8x128xf32> to vector<8xf32>
    %26 = vector.shape_cast %25 : vector<8xf32> to vector<8x1xf32>
    %27 = arith.mulf %24, %24 : vector<8x128xf32>
    %cst_17 = arith.constant dense<0.000000e+00> : vector<8xf32>
    %28 = vector.multi_reduction <add>, %27, %cst_17 [1] : vector<8x128xf32> to vector<8xf32>
    %29 = vector.shape_cast %28 : vector<8xf32> to vector<8x1xf32>
    %cst_18 = arith.constant 7.812500e-03 : f32
    %30 = vector.broadcast %cst_18 : f32 to vector<8x1xf32>
    %31 = arith.mulf %26, %30 : vector<8x1xf32>
    %cst_19 = arith.constant 7.812500e-03 : f32
    %32 = vector.broadcast %cst_19 : f32 to vector<8x1xf32>
    %33 = arith.mulf %29, %32 : vector<8x1xf32>
    %34 = arith.mulf %31, %31 : vector<8x1xf32>
    %35 = arith.subf %33, %34 : vector<8x1xf32>
    %36 = vector.broadcast %31 : vector<8x1xf32> to vector<8x128xf32>
    %37 = arith.subf %24, %36 : vector<8x128xf32>
    %cst_20 = arith.constant 9.99999974E-6 : f32
    %38 = vector.broadcast %cst_20 : f32 to vector<8x1xf32>
    %39 = arith.addf %35, %38 : vector<8x1xf32>
    %40 = math.rsqrt %39 : vector<8x1xf32>
    %41 = vector.broadcast %40 : vector<8x1xf32> to vector<8x128xf32>
    %42 = arith.mulf %37, %41 : vector<8x128xf32>
    %c0_21 = arith.constant 0 : index
    %c0_22 = arith.constant 0 : index
    %43 = vector.load %arg8[%c0_21, %c0_22] : memref<1x128xf32, #tpu.memory_space<vmem>>, vector<1x128xf32>
    %44 = vector.broadcast %43 : vector<1x128xf32> to vector<8x128xf32>
    %45 = arith.mulf %42, %44 : vector<8x128xf32>
    %c0_23 = arith.constant 0 : index
    %c0_24 = arith.constant 0 : index
    %46 = vector.load %arg9[%c0_23, %c0_24] : memref<1x128xf32, #tpu.memory_space<vmem>>, vector<1x128xf32>
    %47 = vector.broadcast %46 : vector<1x128xf32> to vector<8x128xf32>
    %48 = arith.addf %45, %47 : vector<8x128xf32>
    %cst_25 = arith.constant 0.000000e+00 : f32
    %49 = vector.broadcast %cst_25 : f32 to vector<8x128xf32>
    %50 = arith.maximumf %48, %49 : vector<8x128xf32>
    %51 = arith.truncf %50 : vector<8x128xf32> to vector<8x128xbf16>
    %c0_26 = arith.constant 0 : index
    %c0_27 = arith.constant 0 : index
    %52 = vector.load %arg10[%c0_26, %c0_27] : memref<128x128xbf16, #tpu.memory_space<vmem>>, vector<128x128xbf16>
    %cst_28 = arith.constant dense<0.000000e+00> : vector<8x128xf32>
    %53 = tpu.matmul %51, %52, %cst_28 {dimension_numbers = #tpu.dot_dimension_numbers<[1], [0], [0], [1], [0, 0, 1, 1], [], []>} : vector<8x128xbf16>, vector<128x128xbf16>, vector<8x128xf32> -> vector<8x128xf32>
    %c0_29 = arith.constant 0 : index
    %c0_30 = arith.constant 0 : index
    %54 = vector.load %arg11[%c0_29, %c0_30] : memref<1x128xf32, #tpu.memory_space<vmem>>, vector<1x128xf32>
    %55 = vector.broadcast %54 : vector<1x128xf32> to vector<8x128xf32>
    %56 = arith.addf %53, %55 : vector<8x128xf32>
    %c0_31 = arith.constant 0 : index
    %c0_32 = arith.constant 0 : index
    %57 = vector.load %arg12[%c0_31, %c0_32] : memref<8x128xf32, #tpu.memory_space<vmem>>, vector<8x128xf32>
    tpu.vector_store %arg12[%c0_31, %c0_32], %56 {strides = array<i32>} : memref<8x128xf32, #tpu.memory_space<vmem>>, vector<8x128xf32>,
    return
  }
  func.func @transform_0(%arg0: i32) -> (i32, i32) {
    %c0_i32 = arith.constant 0 : i32
    %c0_i32_0 = arith.constant 0 : i32
    return %arg0, %c0_i32 : i32, i32
  }
  func.func @transform_1(%arg0: i32) -> (i32, i32) {
    %c0_i32 = arith.constant 0 : i32
    %c0_i32_0 = arith.constant 0 : i32
    return %arg0, %c0_i32 : i32, i32
  }
  func.func @transform_2(%arg0: i32) -> (i32, i32) {
    %c0_i32 = arith.constant 0 : i32
    %c0_i32_0 = arith.constant 0 : i32
    %c0_i32_1 = arith.constant 0 : i32
    return %c0_i32, %c0_i32_0 : i32, i32
  }
  func.func @transform_3(%arg0: i32) -> (i32, i32) {
    %c0_i32 = arith.constant 0 : i32
    %c0_i32_0 = arith.constant 0 : i32
    %c0_i32_1 = arith.constant 0 : i32
    return %c0_i32, %c0_i32_0 : i32, i32
  }
  func.func @transform_4(%arg0: i32) -> (i32, i32) {
    %c0_i32 = arith.constant 0 : i32
    %c0_i32_0 = arith.constant 0 : i32
    %c0_i32_1 = arith.constant 0 : i32
    return %c0_i32, %c0_i32_0 : i32, i32
  }
  func.func @transform_5(%arg0: i32) -> (i32, i32) {
    %c0_i32 = arith.constant 0 : i32
    %c0_i32_0 = arith.constant 0 : i32
    %c0_i32_1 = arith.constant 0 : i32
    return %c0_i32, %c0_i32_0 : i32, i32
  }
  func.func @transform_6(%arg0: i32) -> (i32, i32) {
    %c0_i32 = arith.constant 0 : i32
    %c0_i32_0 = arith.constant 0 : i32
    %c0_i32_1 = arith.constant 0 : i32
    return %c0_i32, %c0_i32_0 : i32, i32
  }
  func.func @transform_7(%arg0: i32) -> (i32, i32) {
    %c0_i32 = arith.constant 0 : i32
    %c0_i32_0 = arith.constant 0 : i32
    %c0_i32_1 = arith.constant 0 : i32
    return %c0_i32, %c0_i32_0 : i32, i32
  }
  func.func @transform_8(%arg0: i32) -> (i32, i32) {
    %c0_i32 = arith.constant 0 : i32
    %c0_i32_0 = arith.constant 0 : i32
    %c0_i32_1 = arith.constant 0 : i32
    return %c0_i32, %c0_i32_0 : i32, i32
  }
  func.func @transform_9(%arg0: i32) -> (i32, i32) {
    %c0_i32 = arith.constant 0 : i32
    %c0_i32_0 = arith.constant 0 : i32
    %c0_i32_1 = arith.constant 0 : i32
    return %c0_i32, %c0_i32_0 : i32, i32
  }
  func.func @transform_10(%arg0: i32) -> (i32, i32) {
    %c0_i32 = arith.constant 0 : i32
    %c0_i32_0 = arith.constant 0 : i32
    %c0_i32_1 = arith.constant 0 : i32
    return %c0_i32, %c0_i32_0 : i32, i32
  }
  func.func @transform_11(%arg0: i32) -> (i32, i32) {
    %c0_i32 = arith.constant 0 : i32
    %c0_i32_0 = arith.constant 0 : i32
    return %arg0, %c0_i32 : i32, i32
  }
}

</mosaic_0001>

<bundles_post_ra>
// kernel: transition_mlp_forward.1
= control target key start
LH: loop header
LB: loop body
LE: loop exit
PB: predicated region body
PF: predicated region fallthrough
CT: control target
= control target key end

     0   :  { %16 = vsyncpa [#allocation3], 0  ;;  %s731_s0 = inlined_call_operand.vmem [shape: f32[8,128], index: 0, kind: input, shape index: {}]   ;;  %s732_s1 = inlined_call_operand.vmem [shape: s32[8,1], index: 1, kind: input, shape index: {}]   ;;  %s733_s2 = inlined_call_operand.hbm [shape: bf16[128,128], index: 2, kind: input, shape index: {}]   ;;  %s734_s3 = inlined_call_operand.vmem [shape: bf16[16,128], index: 3, kind: input, shape index: {}]   ;;  %s735_s4 = inlined_call_operand.vmem [shape: f32[1,128], index: 4, kind: input, shape index: {}]   ;;  %s736_s5 = inlined_call_operand.hbm [shape: bf16[128,128], index: 5, kind: input, shape index: {}]   ;;  %s737_s6 = inlined_call_operand.vmem [shape: f32[1,128], index: 6, kind: input, shape index: {}]   ;;  %s738_s7 = inlined_call_operand.vmem [shape: f32[1,128], index: 7, kind: input, shape index: {}]   ;;  %s739_s8 = inlined_call_operand.vmem [shape: f32[1,128], index: 8, kind: input, shape index: {}]   ;;  %s740_s9 = inlined_call_operand.hbm [shape: bf16[128,128], index: 9, kind: input, shape index: {}]   ;;  %s741_s10 = inlined_call_operand.vmem [shape: f32[1,128], index: 10, kind: input, shape index: {}]   ;;  %s742_s11 = inlined_call_operand.vmem [shape: f32[8,128], index: 11, kind: output, shape index: {}]  }
   0x1   :  { %17 = vsyncpa [#allocation5], 0  ;;  %s43_s19 = sshll.u32 %s736_s5, 4  ;;  %s628_s20 = smov [#allocation4]   ;;  %s44_s19 = int_to_ptr.hbm [resolvable:$true] %s43_s19 }
   0x2   :  { %s45_s21 = sshll.u32 %s628_s20, 4  ;;  %s26_s24 = sshll.u32 %s733_s2, 4  ;;  %s46_s21 = int_to_ptr.vmem [resolvable:$true] %s45_s21  ;;  %s27_s24 = int_to_ptr.hbm [resolvable:$true] %s26_s24 }
   0x3   :  { %s629_s25 = smov 64   ;;  %s630_s26 = smov 4  }
   0x4   :  { %51 = dma.hbm_to_vmem [thread:$0]  %s44_s19, 1024, %s46_s21, [#allocation5], %s629_s25, %s629_s25, %s630_s26  }
   0x5   :  { %s631_s27 = smov [#allocation2]   ;;  %s62_s12 = sshll.u32 %s740_s9, 4  ;;  %s63_s12 = int_to_ptr.hbm [resolvable:$true] %s62_s12 }
   0x6   :  { %s28_s28 = sshll.u32 %s631_s27, 4  ;;  %s632_s5 = smov [#allocation6]   ;;  %s29_s28 = int_to_ptr.vmem [resolvable:$true] %s28_s28 }
   0x7   :  { %34 = dma.hbm_to_vmem [thread:$0]  %s27_s24, 1024, %s29_s28, [#allocation3], %s629_s25, %s629_s25, %s630_s26  }
   0x8   :  { %s64_s13 = sshll.u32 %s632_s5, 4  ;;  %s65_s13 = int_to_ptr.vmem [resolvable:$true] %s64_s13 }
   0x9   :  { %70 = dma.hbm_to_vmem [thread:$0]  %s63_s12, 1024, %s65_s13, [#allocation5], %s629_s25, %s629_s25, %s630_s26  }
   0xa   :  { %624 = dma.done.wait [#allocation3], 1024  }
   0xb   :  { %625 = vsyncadd [#allocation3], 4294966272 }
   0xc   :  { %626 = dma.done.wait [#allocation5], 2048  }
   0xd   :  { %627 = vsyncadd [#allocation5], 4294965248  ;;  %v633_v0 = vmov 0   ;;  %v89_v1 = vld [vmem:[%s732_s1] sm:$0xff]  ;;  %v519_v2 = vld [vmem:[#allocation2 + $0x38] sm:$0xff]  ;;  %v87_v17 = vlaneseq  ;;  %v634_v20 = vmov 0.0  }
   0xe   :  { %544 = vset.pattern.permute.xlu0 %v633_v0  ;;  %187 = vmatpush.bf16.msra.mxu1 %v519_v2  ;;  %v518_v3 = vld [vmem:[#allocation2 + $0x30] sm:$0xff]  ;;  %v517_v4 = vld [vmem:[#allocation2 + $0x28] sm:$0xff]  ;;  %v516_v5 = vld [vmem:[#allocation2 + $0x20] sm:$0xff]  ;;  %vm122_vm1 = vcmask 130048  }
   0xf   :  { %91 = vperm.xlu0 %544, %v89_v1   ;;  %v515_v6 = vld [vmem:[#allocation2 + $0x18] sm:$0xff]  ;;  %v514_v7 = vld [vmem:[#allocation2 + $0x10] sm:$0xff]  ;;  %v513_v8 = vld [vmem:[#allocation2 + $0x8] sm:$0xff]  ;;  %v88_v18 = vand.u32 127, %v87_v17 }
  0x10   :  { %v512_v9 = vld [vmem:[#allocation2] sm:$0xff]  ;;  %v528_v13 = vld [vmem:[#allocation4 + $0x38] sm:$0xff]  ;;  %v527_v14 = vld [vmem:[#allocation4 + $0x30] sm:$0xff] }
  0x11   :  { %v86_v10 = vld [vmem:[%s731_s0] sm:$0xff]  ;;  %275 = vmatpush.bf16.msra.mxu2 %v528_v13  ;;  %v526_v15 = vld [vmem:[#allocation4 + $0x28] sm:$0xff]  ;;  %v524_v23 = vld [vmem:[#allocation4 + $0x18] sm:$0xff] }
  0x12   :  { %188 = vmatpush.bf16.msra.mxu1 %v518_v3  ;;  %v97_v11 = vpack.c.bf16 %v86_v10, %v86_v10  ;;  %v520_v12 = vld [vmem:[%s734_s3] sm:$0xff]  ;;  %v523_v24 = vld [vmem:[#allocation4 + $0x10] sm:$0xff]  ;;  %v522_v27 = vld [vmem:[#allocation4 + $0x8] sm:$0xff] }
  0x13   :  { %133 = vmatpush.bf16.msra.mxu0 %v520_v12  ;;  %v525_v16 = vld [vmem:[#allocation4 + $0x20] sm:$0xff]  ;;  %v536_v41 = vld [vmem:[#allocation6 + $0x38] sm:$0xff]  ;;  %v535_v42 = vld [vmem:[#allocation6 + $0x30] sm:$0xff] }
  0x14   :  { %v521_v28 = vld [vmem:[#allocation4] sm:$0xff]  ;;  %390 = vmatpush.bf16.msra.mxu3 %v536_v41  ;;  %v534_v43 = vld [vmem:[#allocation6 + $0x28] sm:$0xff]  ;;  %v532_v45 = vld [vmem:[#allocation6 + $0x18] sm:$0xff] }
  0x15   :  { %276 = vmatpush.bf16.msra.mxu2 %v527_v14  ;;  %v545_v29 = vld [vmem:[%s735_s4] ss:$0 sm:$0xff]  ;;  %v531_v46 = vld [vmem:[#allocation6 + $0x10] sm:$0xff]  ;;  %v530_v47 = vld [vmem:[#allocation6 + $0x8] sm:$0xff] }
  0x16   :  { %189 = vmatpush.bf16.msra.mxu1 %v517_v4  ;;  %v546_v36 = vld [vmem:[%s737_s6] ss:$0 sm:$0xff] }
  0x17   :  { %v533_v44 = vld [vmem:[#allocation6 + $0x20] sm:$0xff] }
  0x18   :  { %391 = vmatpush.bf16.msra.mxu3 %v535_v42  ;;  %v529_v48 = vld [vmem:[#allocation6] sm:$0xff] }
  0x19   :  { %277 = vmatpush.bf16.msra.mxu2 %v526_v15  ;;  %v547_v63 = vld [vmem:[%s738_s7] ss:$0 sm:$0xff] }
  0x1a   :  { %190 = vmatpush.bf16.msra.mxu1 %v516_v5  ;;  %v548_v2 = vld [vmem:[%s739_s8] ss:$0 sm:$0xff] }
  0x1c   :  { %392 = vmatpush.bf16.msra.mxu3 %v534_v43 }
  0x1d   :  { %278 = vmatpush.bf16.msra.mxu2 %v525_v16 }
  0x1e   :  { %191 = vmatpush.bf16.msra.mxu1 %v515_v6 }
  0x20   :  { %393 = vmatpush.bf16.msra.mxu3 %v533_v44 }
  0x21   :  { %279 = vmatpush.bf16.msra.mxu2 %v524_v23 }
  0x22   :  { %192 = vmatpush.bf16.msra.mxu1 %v514_v7  ;;  %v549_v7 = vld [vmem:[%s741_s10] ss:$0 sm:$0xff] }
  0x24   :  { %394 = vmatpush.bf16.msra.mxu3 %v532_v45 }
  0x25   :  { %280 = vmatpush.bf16.msra.mxu2 %v523_v24 }
  0x26   :  { %193 = vmatpush.bf16.msra.mxu1 %v513_v8 }
  0x28   :  { %395 = vmatpush.bf16.msra.mxu3 %v531_v46 }
  0x29   :  { %281 = vmatpush.bf16.msra.mxu2 %v522_v27 }
  0x2a   :  { %194 = vmatpush.bf16.msra.mxu1 %v512_v9 }
  0x2c   :  { %396 = vmatpush.bf16.msra.mxu3 %v530_v47 }
  0x2d   :  { %195 = vmatmul.bf16.vlgmr.msra.gmra.mxu1 %v97_v11  ;;  %282 = vmatpush.bf16.msra.mxu2 %v521_v28 }
  0x30   :  { %397 = vmatpush.bf16.msra.mxu3 %v529_v48 }
  0x81   :  { %v92_v19 = vpop.permute.xlu0 %91 }
  0x82   :  { %vm93_vm0 = vcmp.eq.s32.totalorder %v88_v18, %v92_v19 }
  0x83   :  { %v410_v21 = vsel %vm93_vm0, 1.0, %v634_v20 }
  0x84   :  { %v96_v22 = vpack.c.bf16 %v410_v21, %v410_v21 }
  0x86   :  { %415 = vmatmul.msk.bf16.vlgmr.msra.gmra.mxu0 %vm122_vm1, %v96_v22 }
  0xaa   :  { %v196_v25 = vpop.f32.mrf.mxu1 }
  0xb2   :  { %v198_v26 = vpop.f32.mrf.mxu1 }
 0x103   :  { %v135_v30 = vpop.f32.mrf.mxu0 }
 0x104   :  { %v197_v31 = vadd.f32 %v196_v25, %v135_v30 }
 0x106   :  { %v204_v32 = vadd.f32 %v545_v29, %v197_v31 }
 0x108   :  { %v205_v33 = vmax.f32 %v204_v32, 0.0 }
 0x10a   :  { %v206_v34 = vpack.c.bf16 %v205_v33, %v205_v33 }
 0x10b   :  { %v137_v35 = vpop.f32.mrf.mxu0 }
 0x10c   :  { %283 = vmatmul.bf16.vlgmr.msra.gmra.mxu2 %v206_v34 }
 0x18f   :  { %v284_v37 = vpop.f32.mrf.mxu2 }
 0x190   :  { %v285_v38 = vadd.f32 %v546_v36, %v284_v37 }
 0x192   :  { %288 = vadd.xlane.f32.xlu0 %v285_v38  ;;  %v290_v39 = vmul.f32 %v285_v38, %v285_v38 }
 0x194   :  { %291 = vadd.xlane.f32.xlu1 %v290_v39 }
 0x197   :  { %v286_v40 = vpop.f32.mrf.mxu2 }
 0x205   :  { %v289_v49 = vpop.xlane.xlu0 %288 }
 0x206   :  { %v293_v50 = vmul.f32 0.0078125, %v289_v49 }
 0x207   :  { %v292_v51 = vpop.xlane.xlu1 %291 }
 0x208   :  { %v295_v52 = vmul.f32 %v293_v50, %v293_v50  ;;  %v294_v53 = vmul.f32 0.0078125, %v292_v51  ;;  %v297_v62 = vsub.f32 %v285_v38, %v293_v50 }
 0x20a   :  { %v296_v54 = vsub.f32 %v294_v53, %v295_v52 }
 0x20c   :  { %v298_v55 = vadd.f32 1e-05, %v296_v54 }
 0x20e   :  { %550 = vrsqrt.f32 %v298_v55  ;;  %vm305_vm3 = vweird.f32 %v298_v55 }
 0x214   :  { %v551_v56 = vpop.eup %550 }
 0x215   :  { %v300_v57 = vmul.f32 %v551_v56, %v298_v55  ;;  %vm306_vm2 = vweird.f32 %v551_v56 }
 0x216   :  { %vm307_vm4 = vmor %vm305_vm3, %vm306_vm2 }
 0x217   :  { %v301_v58 = vmul.f32 %v551_v56, %v300_v57 }
 0x219   :  { %v302_v59 = vmul.f32 0.5, %v301_v58 }
 0x21b   :  { %v303_v60 = vsub.f32 1.5, %v302_v59 }
 0x21d   :  { %v304_v61 = vmul.f32 %v551_v56, %v303_v60 }
 0x21f   :  { %v308_v0 = vsel %vm307_vm4, %v551_v56, %v304_v61 }
 0x220   :  { %v309_v1 = vmul.f32 %v308_v0, %v297_v62 }
 0x222   :  { %v314_v3 = vmul.f32 %v547_v63, %v309_v1 }
 0x224   :  { %v319_v4 = vadd.f32 %v548_v2, %v314_v3 }
 0x226   :  { %v320_v5 = vmax.f32 %v319_v4, 0.0 }
 0x228   :  { %v321_v6 = vpack.c.bf16 %v320_v5, %v320_v5 }
 0x22a   :  { %398 = vmatmul.bf16.vlgmr.msra.gmra.mxu3 %v321_v6 }
 0x2ad   :  { %v399_v8 = vpop.f32.mrf.mxu3 }
 0x2ae   :  { %v400_v9 = vadd.f32 %v549_v7, %v399_v8 }
 0x2b0   :  { %403 = vst [vmem:[%s742_s11] sm:$0xff] %v400_v9 }
 0x2b5   :  { %v401_v10 = vpop.f32.mrf.mxu3 }
 0x2b6   :  { %408 = vsyncpa [#allocation3], 1 }
 0x2b7   :  { %409 = vsyncpa [#allocation5], 1 }

</bundles_post_ra>
